<compile_context>
chip_gen: v7x
topology: tpu7x:2x2x1
jax: 0.10.0
libtpu: 0.0.40
codegen_flags: <defaults>
</compile_context>

<pallas_src>
import functools

import jax
import jax.numpy as jnp
from jax.experimental import pallas as pl
from jax.experimental.pallas import tpu as pltpu


def _round_up(v, m):
    return ((v + m - 1) // m) * m


def _sigmoid_via_tanh(x):
    # Exact identity sigmoid(x) = 0.5*(1 + tanh(x/2)); one EUP op.
    return 0.5 * jnp.tanh(0.5 * x) + 0.5


# ----------------------------------------------------------------------------
# Fused kernel: grid over T time steps; per step: num_layers LSTM cells ->
# fc1 -> log-softmax.  Weights/biases are VMEM-resident (constant index_map);
# (h, c) carried across steps in the VMEM-resident h_out/c_out blocks.
#
#   refs layout (inputs, outputs, scratch):
#     inputs : x_t, h0, c0, (w_l, b_l) * num_layers, fc_w, fc_b
#     outputs: log_probs_t, h_out, c_out
#     scratch: xh0 (bf16), [xh (bf16) if num_layers > 1]
#   w_l: (in_pad_l + Hp, 4*Hp) bf16, gate blocks [i|f|g|o] each Hp lanes wide,
#        rows [0:in_dim] = Wih_T, rows [in_pad_l:in_pad_l+H] = Whh_T, rest 0.
# ----------------------------------------------------------------------------
def _decoder_kernel(num_layers, in_pad, hidden_pad, *refs):
    n_w = 2 * num_layers
    x_ref, h0_ref, c0_ref = refs[0:3]
    layer_refs = refs[3:3 + n_w]
    fc_w_ref = refs[3 + n_w]
    fc_b_ref = refs[4 + n_w]
    logp_ref = refs[5 + n_w]
    h_ref = refs[6 + n_w]          # (L, Bp, Hp) f32, carries state across t
    c_ref = refs[7 + n_w]          # (L, Bp, Hp) f32, carries state across t
    scratch = refs[8 + n_w:]
    xh0_ref = scratch[0]                               # (Bp, in_pad + Hp) bf16
    xh_ref = scratch[1] if num_layers > 1 else None    # (Bp, 2*Hp) bf16

    Hp = hidden_pad
    t = pl.program_id(0)

    @pl.when(t == 0)
    def _():
        h_ref[...] = h0_ref[...]
        c_ref[...] = c0_ref[...]

    layer_in_bf16 = None
    for l in range(num_layers):        # static Python loop (num_layers small)
        w_ref = layer_refs[2 * l]
        b_ref = layer_refs[2 * l + 1]
        h_prev = h_ref[l]              # f32 (Bp, Hp), previous-step state
        c_prev = c_ref[l]

        # Stage [x_or_hprevlayer | h_prev] into the persistent bf16 scratch;
        # both writes are full-row, 128-lane-aligned slices.
        if l == 0:
            cur, split = xh0_ref, in_pad
            cur[:, :split] = x_ref[...].astype(jnp.bfloat16)
        else:
            cur, split = xh_ref, Hp
            cur[:, :split] = layer_in_bf16
        cur[:, split:] = h_prev.astype(jnp.bfloat16)

        # One wide MXU matmul (bf16 in, f32 acc) + plain vreg bias add.
        gates = (jnp.dot(cur[...], w_ref[...],
                         preferred_element_type=jnp.float32) + b_ref[...])

        # Lane-aligned gate slices (each Hp = multiple of 128 lanes).
        i_g = _sigmoid_via_tanh(gates[:, 0 * Hp:1 * Hp])
        f_g = _sigmoid_via_tanh(gates[:, 1 * Hp:2 * Hp])
        g_g = jnp.tanh(gates[:, 2 * Hp:3 * Hp])
        o_g = _sigmoid_via_tanh(gates[:, 3 * Hp:4 * Hp])

        c_new = f_g * c_prev + i_g * g_g
        h_new = o_g * jnp.tanh(c_new)

        h_ref[l] = h_new               # f32 carry across time steps
        c_ref[l] = c_new
        layer_in_bf16 = h_new.astype(jnp.bfloat16)

    # fc1 + log-softmax.  Padded output lanes have zero weight columns and a
    # -1e30 bias baked in at pack time, so no mask is needed here.
    logits = (jnp.dot(layer_in_bf16, fc_w_ref[...],
                      preferred_element_type=jnp.float32) + fc_b_ref[...])
    m = jnp.max(logits, axis=-1, keepdims=True)
    z = logits - m
    lse = jnp.log(jnp.sum(jnp.exp(z), axis=-1, keepdims=True))
    logp_ref[...] = (z - lse).astype(logp_ref.dtype)


def _vmem_limit_bytes(Bp, in_pad, Hp, Op, packed_layers):
    b = 0
    b += 2 * Bp * in_pad * 4                       # x block (double-buffered)
    b += 2 * Bp * Op * 4                           # logp block (double-buffered)
    b += 4 * len(packed_layers) * Bp * Hp * 4      # h0, c0, h_out, c_out
    for w, _bias in packed_layers:
        b += 2 * w.shape[0] * w.shape[1]           # bf16 packed weights
        b += Bp * 4 * Hp * 4                       # replicated bias
    b += 2 * Hp * Op + Bp * Op * 4                 # fc_w bf16 + fc_b
    b += Bp * (in_pad + 3 * Hp) * 2                # bf16 scratch
    b = 2 * b + (4 << 20)                          # buffering + headroom
    return int(max(16 << 20, min(b, 64 << 20)))    # clamp: v7x VMEM is 64 MiB


def _forward_padded(num_layers, input_size, hidden_size, output_size,
                    in_pad, h_pad, o_pad, weights, inp, h0, c0):
    """Jitted: pad -> fused pallas_call over all T steps -> slice."""
    packed_layers, fc_w_p, fc_b_p = weights
    T, B, _ = inp.shape
    Bp = _round_up(max(B, 1), 8)
    L, H, Hp, Op = num_layers, hidden_size, h_pad, o_pad

    x_p = jnp.zeros((T, Bp, in_pad), jnp.float32).at[:, :B, :input_size].set(inp)
    h0_p = jnp.zeros((L, Bp, Hp), jnp.float32).at[:, :B, :H].set(h0)
    c0_p = jnp.zeros((L, Bp, Hp), jnp.float32).at[:, :B, :H].set(c0)

    # Pre-replicate biases so the in-kernel add is a plain vreg add.
    b_rep = [jnp.broadcast_to(b, (Bp, 4 * Hp)) for (_w, b) in packed_layers]
    fc_b_rep = jnp.broadcast_to(fc_b_p, (Bp, Op))

    flat_args = [x_p, h0_p, c0_p]
    in_specs = [
        pl.BlockSpec((None, Bp, in_pad), lambda t: (t, 0, 0)),   # x_t (pipelined)
        pl.BlockSpec((L, Bp, Hp), lambda t: (0, 0, 0)),          # h0 (resident)
        pl.BlockSpec((L, Bp, Hp), lambda t: (0, 0, 0)),          # c0 (resident)
    ]
    for (w, _b), br in zip(packed_layers, b_rep):
        flat_args.append(w)
        in_specs.append(pl.BlockSpec(tuple(w.shape), lambda t: (0, 0)))
        flat_args.append(br)
        in_specs.append(pl.BlockSpec((Bp, 4 * Hp), lambda t: (0, 0)))
    flat_args.append(fc_w_p)
    in_specs.append(pl.BlockSpec(tuple(fc_w_p.shape), lambda t: (0, 0)))
    flat_args.append(fc_b_rep)
    in_specs.append(pl.BlockSpec((Bp, Op), lambda t: (0, 0)))

    out_specs = (
        pl.BlockSpec((None, Bp, Op), lambda t: (t, 0, 0)),       # log-probs_t
        pl.BlockSpec((L, Bp, Hp), lambda t: (0, 0, 0)),          # h_out (resident)
        pl.BlockSpec((L, Bp, Hp), lambda t: (0, 0, 0)),          # c_out (resident)
    )
    scratch_shapes = [pltpu.VMEM((Bp, in_pad + Hp), jnp.bfloat16)]
    if L > 1:
        scratch_shapes.append(pltpu.VMEM((Bp, 2 * Hp), jnp.bfloat16))

    kernel = functools.partial(_decoder_kernel, L, in_pad, Hp)
    logp_p, h_new_p, c_new_p = pl.pallas_call(
        kernel,
        out_shape=(
            jax.ShapeDtypeStruct((T, Bp, Op), jnp.float32),
            jax.ShapeDtypeStruct((L, Bp, Hp), jnp.float32),
            jax.ShapeDtypeStruct((L, Bp, Hp), jnp.float32),
        ),
        grid_spec=pltpu.PrefetchScalarGridSpec(
            num_scalar_prefetch=0, grid=(T,),
            in_specs=in_specs, out_specs=out_specs,
            scratch_shapes=scratch_shapes),
        input_output_aliases={1: 1, 2: 2},       # h0 -> h_out, c0 -> c_out
        compiler_params=pltpu.CompilerParams(
            dimension_semantics=("arbitrary",),
            vmem_limit_bytes=_vmem_limit_bytes(Bp, in_pad, Hp, Op,
                                               packed_layers)),
    )(*flat_args)

    return (logp_p[:, :B, :output_size],
            h_new_p[:, :B, :H],
            c_new_p[:, :B, :H])


# ----------------------------------------------------------------------------
# Host-side weight packing (pad per gate, fuse Wih/Whh, cast to bf16)
# ----------------------------------------------------------------------------
def _pack_lstm_layer(wih_t, whh_t, b_ih, b_hh, in_dim, in_pad, H, Hp):
    w = jnp.zeros((in_pad + Hp, 4 * Hp), jnp.float32)
    b = jnp.zeros((1, 4 * Hp), jnp.float32)
    bsum = b_ih + b_hh
    for g in range(4):
        w = w.at[:in_dim, g * Hp:g * Hp + H].set(wih_t[:, g * H:(g + 1) * H])
        w = w.at[in_pad:in_pad + H, g * Hp:g * Hp + H].set(
            whh_t[:, g * H:(g + 1) * H])
        b = b.at[0, g * Hp:g * Hp + H].set(bsum[g * H:(g + 1) * H])
    return w.astype(jnp.bfloat16), b


def _pack_fc(w_t, bias, H, Hp, O, Op):
    wp = jnp.zeros((Hp, Op), jnp.float32).at[:H, :O].set(w_t)
    # Bake the padded-lane mask into the bias: padded weight columns are zero,
    # so a -1e30 bias makes padded logits -1e30 with no in-kernel masking.
    bp = jnp.full((1, Op), -1e30, jnp.float32).at[0, :O].set(bias)
    return wp.astype(jnp.bfloat16), bp


# ----------------------------------------------------------------------------
# Decoder module (mirrors the PyTorch class; handles T >= 1 like nn.LSTM)
# ----------------------------------------------------------------------------
class Decoder:
    def __init__(self, input_size, hidden_size, output_size, num_layers=1,
                 key=jax.random.PRNGKey(0)):
        self.input_size = input_size
        self.hidden_size = hidden_size
        self.output_size = output_size
        self.num_layers = num_layers

        self.in_pad = _round_up(input_size, 128)
        self.h_pad = _round_up(hidden_size, 128)
        self.o_pad = _round_up(output_size, 128)

        k = 1.0 / jnp.sqrt(hidden_size)  # PyTorch default uniform(-k, k)
        keys = jax.random.split(key, num_layers * 4 + 2)

        self._raw_lstm = []     # f32 originals, kept for the reference check
        packed_layers = []
        for layer in range(num_layers):
            in_dim = input_size if layer == 0 else hidden_size
            in_pad = self.in_pad if layer == 0 else self.h_pad
            kw = keys[layer * 4: layer * 4 + 4]
            wih_t = jax.random.uniform(kw[0], (in_dim, 4 * hidden_size),
                                       jnp.float32, -k, k)
            whh_t = jax.random.uniform(kw[1], (hidden_size, 4 * hidden_size),
                                       jnp.float32, -k, k)
            b_ih = jax.random.uniform(kw[2], (4 * hidden_size,),
                                      jnp.float32, -k, k)
            b_hh = jax.random.uniform(kw[3], (4 * hidden_size,),
                                      jnp.float32, -k, k)
            self._raw_lstm.append((wih_t, whh_t, b_ih + b_hh))
            packed_layers.append(
                _pack_lstm_layer(wih_t, whh_t, b_ih, b_hh,
                                 in_dim, in_pad, hidden_size, self.h_pad))

        kf = keys[num_layers * 4: num_layers * 4 + 2]
        fc_w_t = jax.random.uniform(kf[0], (hidden_size, output_size),
                                    jnp.float32, -k, k)
        fc_b = jax.random.uniform(kf[1], (output_size,), jnp.float32, -k, k)
        self._raw_fc = (fc_w_t, fc_b)
        fc_w_p, fc_b_p = _pack_fc(fc_w_t, fc_b, hidden_size, self.h_pad,
                                  output_size, self.o_pad)

        self._weights = (tuple(packed_layers), fc_w_p, fc_b_p)
        self._jit_forward = jax.jit(functools.partial(
            _forward_padded, num_layers, input_size, hidden_size, output_size,
            self.in_pad, self.h_pad, self.o_pad))

    def forward(self, inp, hidden):
        """
        inp:    (T, batch, input_size)   (module spec uses T == 1)
        hidden: (h0, c0), each (num_layers, batch, hidden_size)
        returns (log_probs (T, batch, output_size), (h_new, c_new))
        """
        h0, c0 = hidden
        log_probs, h_new, c_new = self._jit_forward(self._weights, inp, h0, c0)
        return log_probs, (h_new, c_new)

    # Pure-JAX f32 reference (PyTorch semantics) for validation.
    def reference_forward(self, inp, hidden):
        h0, c0 = hidden
        H = self.hidden_size
        h = [h0[l] for l in range(self.num_layers)]
        c = [c0[l] for l in range(self.num_layers)]
        outs = []
        for t in range(inp.shape[0]):
            layer_in = inp[t]
            for l in range(self.num_layers):
                wih_t, whh_t, b = self._raw_lstm[l]
                gates = layer_in @ wih_t + h[l] @ whh_t + b
                i = jax.nn.sigmoid(gates[:, 0 * H:1 * H])
                f = jax.nn.sigmoid(gates[:, 1 * H:2 * H])
                g = jnp.tanh(gates[:, 2 * H:3 * H])
                o = jax.nn.sigmoid(gates[:, 3 * H:4 * H])
                c[l] = f * c[l] + i * g
                h[l] = o * jnp.tanh(c[l])
                layer_in = h[l]
            outs.append(layer_in)
        fc_w_t, fc_b = self._raw_fc
        logits = jnp.stack(outs, 0) @ fc_w_t + fc_b
        logp = jax.nn.log_softmax(logits, axis=-1)
        return logp, (jnp.stack(h, 0), jnp.stack(c, 0))


if __name__ == "__main__":
    # Small deterministic example: N_LETTER=28, hidden=32, batch=4, 2 layers.
    input_size = 28     # N_LETTER
    hidden_size = 32
    output_size = 28    # N_LETTER
    num_layers = 2
    batch = 4

    key = jax.random.PRNGKey(0)
    k_in, k_h, k_c, k_p, k_seq = jax.random.split(key, 5)

    inp = jax.random.normal(k_in, (1, batch, input_size), jnp.float32)
    h0 = jax.random.normal(k_h, (num_layers, batch, hidden_size), jnp.float32)
    c0 = jax.random.normal(k_c, (num_layers, batch, hidden_size), jnp.float32)

    dec = Decoder(input_size, hidden_size, output_size, num_layers, key=k_p)

    # --- Single time step (module spec) -------------------------------------
    log_probs, (h_new, c_new) = dec.forward(inp, (h0, c0))
    jax.block_until_ready((log_probs, h_new, c_new))

    assert log_probs.shape == (1, batch, output_size)
    assert h_new.shape == (num_layers, batch, hidden_size)
    assert c_new.shape == (num_layers, batch, hidden_size)
    row_sums = jnp.exp(log_probs).sum(axis=-1)
    assert bool(jnp.all(jnp.abs(row_sums - 1.0) < 1e-3))

    ref_lp, (ref_h, ref_c) = dec.reference_forward(inp, (h0, c0))
    assert bool(jnp.max(jnp.abs(log_probs - ref_lp)) < 0.1)
    assert bool(jnp.max(jnp.abs(h_new - ref_h)) < 0.1)
    assert bool(jnp.max(jnp.abs(c_new - ref_c)) < 0.1)

    # --- Fused multi-step path (in-kernel time loop, weights stay resident) --
    T = 6
    inp_seq = jax.random.normal(k_seq, (T, batch, input_size), jnp.float32)
    lp_seq, (h_seq, c_seq) = dec.forward(inp_seq, (h0, c0))
    jax.block_until_ready((lp_seq, h_seq, c_seq))
    assert lp_seq.shape == (T, batch, output_size)
    ref_lp_seq, (ref_h_seq, ref_c_seq) = dec.reference_forward(inp_seq, (h0, c0))
    assert bool(jnp.max(jnp.abs(lp_seq - ref_lp_seq)) < 0.15)
    assert bool(jnp.max(jnp.abs(h_seq - ref_h_seq)) < 0.15)
    assert bool(jnp.max(jnp.abs(c_seq - ref_c_seq)) < 0.15)

    print("KERNEL_OK")
</pallas_src>

<mosaic_0001>
module attributes {stable_mosaic.version = 11 : i64} {
  func.func @_decoder_kernel(%arg0: i32, %arg1: memref<1x8x128xf32, #tpu.memory_space<vmem>>, %arg2: memref<2x8x128xf32, #tpu.memory_space<vmem>>, %arg3: memref<2x8x128xf32, #tpu.memory_space<vmem>>, %arg4: memref<256x512xbf16, #tpu.memory_space<vmem>>, %arg5: memref<8x512xf32, #tpu.memory_space<vmem>>, %arg6: memref<256x512xbf16, #tpu.memory_space<vmem>>, %arg7: memref<8x512xf32, #tpu.memory_space<vmem>>, %arg8: memref<128x128xbf16, #tpu.memory_space<vmem>>, %arg9: memref<8x128xf32, #tpu.memory_space<vmem>>, %arg10: memref<1x8x128xf32, #tpu.memory_space<vmem>>, %arg11: memref<2x8x128xf32, #tpu.memory_space<vmem>>, %arg12: memref<2x8x128xf32, #tpu.memory_space<vmem>>, %arg13: memref<8x256xbf16, #tpu.memory_space<vmem>>, %arg14: memref<8x256xbf16, #tpu.memory_space<vmem>>) attributes {dimension_semantics = [#tpu.dimension_semantics<arbitrary>], iteration_bounds = array<i64: 1>, scalar_prefetch = 0 : i64, scratch_operands = 2 : i64, tpu.core_type = #tpu.core_type<tc>, window_params = [{transform_indices = @transform_0, window_bounds = array<i64: 1, 8, 128>}, {pipeline_mode = #tpu.pipeline_mode<synchronous>, transform_indices = @transform_1, window_bounds = array<i64: 2, 8, 128>}, {pipeline_mode = #tpu.pipeline_mode<synchronous>, transform_indices = @transform_2, window_bounds = array<i64: 2, 8, 128>}, {pipeline_mode = #tpu.pipeline_mode<synchronous>, transform_indices = @transform_3, window_bounds = array<i64: 256, 512>}, {pipeline_mode = #tpu.pipeline_mode<synchronous>, transform_indices = @transform_4, window_bounds = array<i64: 8, 512>}, {pipeline_mode = #tpu.pipeline_mode<synchronous>, transform_indices = @transform_5, window_bounds = array<i64: 256, 512>}, {pipeline_mode = #tpu.pipeline_mode<synchronous>, transform_indices = @transform_6, window_bounds = array<i64: 8, 512>}, {pipeline_mode = #tpu.pipeline_mode<synchronous>, transform_indices = @transform_7, window_bounds = array<i64: 128, 128>}, {pipeline_mode = #tpu.pipeline_mode<synchronous>, transform_indices = @transform_8, window_bounds = array<i64: 8, 128>}, {transform_indices = @transform_9, window_bounds = array<i64: 1, 8, 128>}, {pipeline_mode = #tpu.pipeline_mode<synchronous>, transform_indices = @transform_10, window_bounds = array<i64: 2, 8, 128>}, {pipeline_mode = #tpu.pipeline_mode<synchronous>, transform_indices = @transform_11, window_bounds = array<i64: 2, 8, 128>}]} {
    %c0_i32 = arith.constant 0 : i32
    %0 = arith.cmpi eq, %arg0, %c0_i32 : i32
    %1 = arith.extui %0 : i1 to i32
    %c0_i32_0 = arith.constant 0 : i32
    %2 = arith.cmpi ne, %1, %c0_i32_0 : i32
    scf.if %2 {
      %c0_74 = arith.constant 0 : index
      %c0_75 = arith.constant 0 : index
      %c0_76 = arith.constant 0 : index
      %123 = vector.load %arg2[%c0_74, %c0_75, %c0_76] : memref<2x8x128xf32, #tpu.memory_space<vmem>>, vector<2x8x128xf32>
      %c0_77 = arith.constant 0 : index
      %c0_78 = arith.constant 0 : index
      %c0_79 = arith.constant 0 : index
      %124 = vector.load %arg11[%c0_77, %c0_78, %c0_79] : memref<2x8x128xf32, #tpu.memory_space<vmem>>, vector<2x8x128xf32>
      tpu.vector_store %arg11[%c0_77, %c0_78, %c0_79], %123 {strides = array<i32>} : memref<2x8x128xf32, #tpu.memory_space<vmem>>, vector<2x8x128xf32>,
      %c0_80 = arith.constant 0 : index
      %c0_81 = arith.constant 0 : index
      %c0_82 = arith.constant 0 : index
      %125 = vector.load %arg3[%c0_80, %c0_81, %c0_82] : memref<2x8x128xf32, #tpu.memory_space<vmem>>, vector<2x8x128xf32>
      %c0_83 = arith.constant 0 : index
      %c0_84 = arith.constant 0 : index
      %c0_85 = arith.constant 0 : index
      %126 = vector.load %arg12[%c0_83, %c0_84, %c0_85] : memref<2x8x128xf32, #tpu.memory_space<vmem>>, vector<2x8x128xf32>
      tpu.vector_store %arg12[%c0_83, %c0_84, %c0_85], %125 {strides = array<i32>} : memref<2x8x128xf32, #tpu.memory_space<vmem>>, vector<2x8x128xf32>,
    } else {
    }
    %c0 = arith.constant 0 : index
    %c0_1 = arith.constant 0 : index
    %c0_2 = arith.constant 0 : index
    %3 = vector.load %arg11[%c0, %c0_1, %c0_2] : memref<2x8x128xf32, #tpu.memory_space<vmem>>, vector<1x8x128xf32>
    %4 = vector.shape_cast %3 : vector<1x8x128xf32> to vector<8x128xf32>
    %c0_3 = arith.constant 0 : index
    %c0_4 = arith.constant 0 : index
    %c0_5 = arith.constant 0 : index
    %5 = vector.load %arg12[%c0_3, %c0_4, %c0_5] : memref<2x8x128xf32, #tpu.memory_space<vmem>>, vector<1x8x128xf32>
    %6 = vector.shape_cast %5 : vector<1x8x128xf32> to vector<8x128xf32>
    %c0_6 = arith.constant 0 : index
    %c0_7 = arith.constant 0 : index
    %c0_8 = arith.constant 0 : index
    %7 = vector.load %arg1[%c0_6, %c0_7, %c0_8] : memref<1x8x128xf32, #tpu.memory_space<vmem>>, vector<1x8x128xf32>
    %8 = vector.shape_cast %7 : vector<1x8x128xf32> to vector<8x128xf32>
    %9 = arith.truncf %8 : vector<8x128xf32> to vector<8x128xbf16>
    %c0_9 = arith.constant 0 : index
    %c0_10 = arith.constant 0 : index
    %10 = vector.load %arg13[%c0_9, %c0_10] : memref<8x256xbf16, #tpu.memory_space<vmem>>, vector<8x128xbf16>
    tpu.vector_store %arg13[%c0_9, %c0_10], %9 {strides = array<i32>} : memref<8x256xbf16, #tpu.memory_space<vmem>>, vector<8x128xbf16>,
    %11 = arith.truncf %4 : vector<8x128xf32> to vector<8x128xbf16>
    %c0_11 = arith.constant 0 : index
    %c128 = arith.constant 128 : index
    %12 = vector.load %arg13[%c0_11, %c128] : memref<8x256xbf16, #tpu.memory_space<vmem>>, vector<8x128xbf16>
    tpu.vector_store %arg13[%c0_11, %c128], %11 {strides = array<i32>} : memref<8x256xbf16, #tpu.memory_space<vmem>>, vector<8x128xbf16>,
    %c0_12 = arith.constant 0 : index
    %c0_13 = arith.constant 0 : index
    %13 = vector.load %arg13[%c0_12, %c0_13] : memref<8x256xbf16, #tpu.memory_space<vmem>>, vector<8x256xbf16>
    %c0_14 = arith.constant 0 : index
    %c0_15 = arith.constant 0 : index
    %14 = vector.load %arg4[%c0_14, %c0_15] : memref<256x512xbf16, #tpu.memory_space<vmem>>, vector<256x512xbf16>
    %cst = arith.constant dense<0.000000e+00> : vector<8x512xf32>
    %15 = tpu.matmul %13, %14, %cst {dimension_numbers = #tpu.dot_dimension_numbers<[1], [0], [0], [1], [0, 0, 1, 1], [], []>} : vector<8x256xbf16>, vector<256x512xbf16>, vector<8x512xf32> -> vector<8x512xf32>
    %c0_16 = arith.constant 0 : index
    %c0_17 = arith.constant 0 : index
    %16 = vector.load %arg5[%c0_16, %c0_17] : memref<8x512xf32, #tpu.memory_space<vmem>>, vector<8x512xf32>
    %17 = arith.addf %15, %16 : vector<8x512xf32>
    %18 = vector.extract_strided_slice %17 {offsets = [0, 0], sizes = [8, 128], strides = [1, 1]} : vector<8x512xf32> to vector<8x128xf32>
    %cst_18 = arith.constant 5.000000e-01 : f32
    %19 = vector.broadcast %cst_18 : f32 to vector<8x128xf32>
    %20 = arith.mulf %19, %18 : vector<8x128xf32>
    %21 = math.tanh %20 : vector<8x128xf32>
    %cst_19 = arith.constant 5.000000e-01 : f32
    %22 = vector.broadcast %cst_19 : f32 to vector<8x128xf32>
    %23 = arith.mulf %22, %21 : vector<8x128xf32>
    %cst_20 = arith.constant 5.000000e-01 : f32
    %24 = vector.broadcast %cst_20 : f32 to vector<8x128xf32>
    %25 = arith.addf %23, %24 : vector<8x128xf32>
    %26 = vector.extract_strided_slice %17 {offsets = [0, 128], sizes = [8, 128], strides = [1, 1]} : vector<8x512xf32> to vector<8x128xf32>
    %cst_21 = arith.constant 5.000000e-01 : f32
    %27 = vector.broadcast %cst_21 : f32 to vector<8x128xf32>
    %28 = arith.mulf %27, %26 : vector<8x128xf32>
    %29 = math.tanh %28 : vector<8x128xf32>
    %cst_22 = arith.constant 5.000000e-01 : f32
    %30 = vector.broadcast %cst_22 : f32 to vector<8x128xf32>
    %31 = arith.mulf %30, %29 : vector<8x128xf32>
    %cst_23 = arith.constant 5.000000e-01 : f32
    %32 = vector.broadcast %cst_23 : f32 to vector<8x128xf32>
    %33 = arith.addf %31, %32 : vector<8x128xf32>
    %34 = vector.extract_strided_slice %17 {offsets = [0, 256], sizes = [8, 128], strides = [1, 1]} : vector<8x512xf32> to vector<8x128xf32>
    %35 = math.tanh %34 : vector<8x128xf32>
    %36 = vector.extract_strided_slice %17 {offsets = [0, 384], sizes = [8, 128], strides = [1, 1]} : vector<8x512xf32> to vector<8x128xf32>
    %cst_24 = arith.constant 5.000000e-01 : f32
    %37 = vector.broadcast %cst_24 : f32 to vector<8x128xf32>
    %38 = arith.mulf %37, %36 : vector<8x128xf32>
    %39 = math.tanh %38 : vector<8x128xf32>
    %cst_25 = arith.constant 5.000000e-01 : f32
    %40 = vector.broadcast %cst_25 : f32 to vector<8x128xf32>
    %41 = arith.mulf %40, %39 : vector<8x128xf32>
    %cst_26 = arith.constant 5.000000e-01 : f32
    %42 = vector.broadcast %cst_26 : f32 to vector<8x128xf32>
    %43 = arith.addf %41, %42 : vector<8x128xf32>
    %44 = arith.mulf %33, %6 : vector<8x128xf32>
    %45 = arith.mulf %25, %35 : vector<8x128xf32>
    %46 = arith.addf %44, %45 : vector<8x128xf32>
    %47 = math.tanh %46 : vector<8x128xf32>
    %48 = arith.mulf %43, %47 : vector<8x128xf32>
    %c0_27 = arith.constant 0 : index
    %c0_28 = arith.constant 0 : index
    %c0_29 = arith.constant 0 : index
    %49 = vector.load %arg11[%c0_27, %c0_28, %c0_29] : memref<2x8x128xf32, #tpu.memory_space<vmem>>, vector<1x8x128xf32>
    %50 = vector.shape_cast %49 : vector<1x8x128xf32> to vector<8x128xf32>
    %51 = vector.shape_cast %48 : vector<8x128xf32> to vector<1x8x128xf32>
    tpu.vector_store %arg11[%c0_27, %c0_28, %c0_29], %51 {strides = array<i32>} : memref<2x8x128xf32, #tpu.memory_space<vmem>>, vector<1x8x128xf32>,
    %c0_30 = arith.constant 0 : index
    %c0_31 = arith.constant 0 : index
    %c0_32 = arith.constant 0 : index
    %52 = vector.load %arg12[%c0_30, %c0_31, %c0_32] : memref<2x8x128xf32, #tpu.memory_space<vmem>>, vector<1x8x128xf32>
    %53 = vector.shape_cast %52 : vector<1x8x128xf32> to vector<8x128xf32>
    %54 = vector.shape_cast %46 : vector<8x128xf32> to vector<1x8x128xf32>
    tpu.vector_store %arg12[%c0_30, %c0_31, %c0_32], %54 {strides = array<i32>} : memref<2x8x128xf32, #tpu.memory_space<vmem>>, vector<1x8x128xf32>,
    %55 = arith.truncf %48 : vector<8x128xf32> to vector<8x128xbf16>
    %c1 = arith.constant 1 : index
    %c0_33 = arith.constant 0 : index
    %c0_34 = arith.constant 0 : index
    %56 = vector.load %arg11[%c1, %c0_33, %c0_34] : memref<2x8x128xf32, #tpu.memory_space<vmem>>, vector<1x8x128xf32>
    %57 = vector.shape_cast %56 : vector<1x8x128xf32> to vector<8x128xf32>
    %c1_35 = arith.constant 1 : index
    %c0_36 = arith.constant 0 : index
    %c0_37 = arith.constant 0 : index
    %58 = vector.load %arg12[%c1_35, %c0_36, %c0_37] : memref<2x8x128xf32, #tpu.memory_space<vmem>>, vector<1x8x128xf32>
    %59 = vector.shape_cast %58 : vector<1x8x128xf32> to vector<8x128xf32>
    %c0_38 = arith.constant 0 : index
    %c0_39 = arith.constant 0 : index
    %60 = vector.load %arg14[%c0_38, %c0_39] : memref<8x256xbf16, #tpu.memory_space<vmem>>, vector<8x128xbf16>
    tpu.vector_store %arg14[%c0_38, %c0_39], %55 {strides = array<i32>} : memref<8x256xbf16, #tpu.memory_space<vmem>>, vector<8x128xbf16>,
    %61 = arith.truncf %57 : vector<8x128xf32> to vector<8x128xbf16>
    %c0_40 = arith.constant 0 : index
    %c128_41 = arith.constant 128 : index
    %62 = vector.load %arg14[%c0_40, %c128_41] : memref<8x256xbf16, #tpu.memory_space<vmem>>, vector<8x128xbf16>
    tpu.vector_store %arg14[%c0_40, %c128_41], %61 {strides = array<i32>} : memref<8x256xbf16, #tpu.memory_space<vmem>>, vector<8x128xbf16>,
    %c0_42 = arith.constant 0 : index
    %c0_43 = arith.constant 0 : index
    %63 = vector.load %arg14[%c0_42, %c0_43] : memref<8x256xbf16, #tpu.memory_space<vmem>>, vector<8x256xbf16>
    %c0_44 = arith.constant 0 : index
    %c0_45 = arith.constant 0 : index
    %64 = vector.load %arg6[%c0_44, %c0_45] : memref<256x512xbf16, #tpu.memory_space<vmem>>, vector<256x512xbf16>
    %cst_46 = arith.constant dense<0.000000e+00> : vector<8x512xf32>
    %65 = tpu.matmul %63, %64, %cst_46 {dimension_numbers = #tpu.dot_dimension_numbers<[1], [0], [0], [1], [0, 0, 1, 1], [], []>} : vector<8x256xbf16>, vector<256x512xbf16>, vector<8x512xf32> -> vector<8x512xf32>
    %c0_47 = arith.constant 0 : index
    %c0_48 = arith.constant 0 : index
    %66 = vector.load %arg7[%c0_47, %c0_48] : memref<8x512xf32, #tpu.memory_space<vmem>>, vector<8x512xf32>
    %67 = arith.addf %65, %66 : vector<8x512xf32>
    %68 = vector.extract_strided_slice %67 {offsets = [0, 0], sizes = [8, 128], strides = [1, 1]} : vector<8x512xf32> to vector<8x128xf32>
    %cst_49 = arith.constant 5.000000e-01 : f32
    %69 = vector.broadcast %cst_49 : f32 to vector<8x128xf32>
    %70 = arith.mulf %69, %68 : vector<8x128xf32>
    %71 = math.tanh %70 : vector<8x128xf32>
    %cst_50 = arith.constant 5.000000e-01 : f32
    %72 = vector.broadcast %cst_50 : f32 to vector<8x128xf32>
    %73 = arith.mulf %72, %71 : vector<8x128xf32>
    %cst_51 = arith.constant 5.000000e-01 : f32
    %74 = vector.broadcast %cst_51 : f32 to vector<8x128xf32>
    %75 = arith.addf %73, %74 : vector<8x128xf32>
    %76 = vector.extract_strided_slice %67 {offsets = [0, 128], sizes = [8, 128], strides = [1, 1]} : vector<8x512xf32> to vector<8x128xf32>
    %cst_52 = arith.constant 5.000000e-01 : f32
    %77 = vector.broadcast %cst_52 : f32 to vector<8x128xf32>
    %78 = arith.mulf %77, %76 : vector<8x128xf32>
    %79 = math.tanh %78 : vector<8x128xf32>
    %cst_53 = arith.constant 5.000000e-01 : f32
    %80 = vector.broadcast %cst_53 : f32 to vector<8x128xf32>
    %81 = arith.mulf %80, %79 : vector<8x128xf32>
    %cst_54 = arith.constant 5.000000e-01 : f32
    %82 = vector.broadcast %cst_54 : f32 to vector<8x128xf32>
    %83 = arith.addf %81, %82 : vector<8x128xf32>
    %84 = vector.extract_strided_slice %67 {offsets = [0, 256], sizes = [8, 128], strides = [1, 1]} : vector<8x512xf32> to vector<8x128xf32>
    %85 = math.tanh %84 : vector<8x128xf32>
    %86 = vector.extract_strided_slice %67 {offsets = [0, 384], sizes = [8, 128], strides = [1, 1]} : vector<8x512xf32> to vector<8x128xf32>
    %cst_55 = arith.constant 5.000000e-01 : f32
    %87 = vector.broadcast %cst_55 : f32 to vector<8x128xf32>
    %88 = arith.mulf %87, %86 : vector<8x128xf32>
    %89 = math.tanh %88 : vector<8x128xf32>
    %cst_56 = arith.constant 5.000000e-01 : f32
    %90 = vector.broadcast %cst_56 : f32 to vector<8x128xf32>
    %91 = arith.mulf %90, %89 : vector<8x128xf32>
    %cst_57 = arith.constant 5.000000e-01 : f32
    %92 = vector.broadcast %cst_57 : f32 to vector<8x128xf32>
    %93 = arith.addf %91, %92 : vector<8x128xf32>
    %94 = arith.mulf %83, %59 : vector<8x128xf32>
    %95 = arith.mulf %75, %85 : vector<8x128xf32>
    %96 = arith.addf %94, %95 : vector<8x128xf32>
    %97 = math.tanh %96 : vector<8x128xf32>
    %98 = arith.mulf %93, %97 : vector<8x128xf32>
    %c1_58 = arith.constant 1 : index
    %c0_59 = arith.constant 0 : index
    %c0_60 = arith.constant 0 : index
    %99 = vector.load %arg11[%c1_58, %c0_59, %c0_60] : memref<2x8x128xf32, #tpu.memory_space<vmem>>, vector<1x8x128xf32>
    %100 = vector.shape_cast %99 : vector<1x8x128xf32> to vector<8x128xf32>
    %101 = vector.shape_cast %98 : vector<8x128xf32> to vector<1x8x128xf32>
    tpu.vector_store %arg11[%c1_58, %c0_59, %c0_60], %101 {strides = array<i32>} : memref<2x8x128xf32, #tpu.memory_space<vmem>>, vector<1x8x128xf32>,
    %c1_61 = arith.constant 1 : index
    %c0_62 = arith.constant 0 : index
    %c0_63 = arith.constant 0 : index
    %102 = vector.load %arg12[%c1_61, %c0_62, %c0_63] : memref<2x8x128xf32, #tpu.memory_space<vmem>>, vector<1x8x128xf32>
    %103 = vector.shape_cast %102 : vector<1x8x128xf32> to vector<8x128xf32>
    %104 = vector.shape_cast %96 : vector<8x128xf32> to vector<1x8x128xf32>
    tpu.vector_store %arg12[%c1_61, %c0_62, %c0_63], %104 {strides = array<i32>} : memref<2x8x128xf32, #tpu.memory_space<vmem>>, vector<1x8x128xf32>,
    %105 = arith.truncf %98 : vector<8x128xf32> to vector<8x128xbf16>
    %c0_64 = arith.constant 0 : index
    %c0_65 = arith.constant 0 : index
    %106 = vector.load %arg8[%c0_64, %c0_65] : memref<128x128xbf16, #tpu.memory_space<vmem>>, vector<128x128xbf16>
    %cst_66 = arith.constant dense<0.000000e+00> : vector<8x128xf32>
    %107 = tpu.matmul %105, %106, %cst_66 {dimension_numbers = #tpu.dot_dimension_numbers<[1], [0], [0], [1], [0, 0, 1, 1], [], []>} : vector<8x128xbf16>, vector<128x128xbf16>, vector<8x128xf32> -> vector<8x128xf32>
    %c0_67 = arith.constant 0 : index
    %c0_68 = arith.constant 0 : index
    %108 = vector.load %arg9[%c0_67, %c0_68] : memref<8x128xf32, #tpu.memory_space<vmem>>, vector<8x128xf32>
    %109 = arith.addf %107, %108 : vector<8x128xf32>
    %cst_69 = arith.constant dense<0xFF800000> : vector<8xf32>
    %110 = vector.multi_reduction <maximumf>, %109, %cst_69 [1] : vector<8x128xf32> to vector<8xf32>
    %111 = vector.shape_cast %110 : vector<8xf32> to vector<8x1xf32>
    %112 = vector.broadcast %111 : vector<8x1xf32> to vector<8x128xf32>
    %113 = arith.subf %109, %112 : vector<8x128xf32>
    %114 = math.exp %113 : vector<8x128xf32>
    %cst_70 = arith.constant dense<0.000000e+00> : vector<8xf32>
    %115 = vector.multi_reduction <add>, %114, %cst_70 [1] : vector<8x128xf32> to vector<8xf32>
    %116 = vector.shape_cast %115 : vector<8xf32> to vector<8x1xf32>
    %117 = math.log %116 : vector<8x1xf32>
    %118 = vector.broadcast %117 : vector<8x1xf32> to vector<8x128xf32>
    %119 = arith.subf %113, %118 : vector<8x128xf32>
    %c0_71 = arith.constant 0 : index
    %c0_72 = arith.constant 0 : index
    %c0_73 = arith.constant 0 : index
    %120 = vector.load %arg10[%c0_71, %c0_72, %c0_73] : memref<1x8x128xf32, #tpu.memory_space<vmem>>, vector<1x8x128xf32>
    %121 = vector.shape_cast %120 : vector<1x8x128xf32> to vector<8x128xf32>
    %122 = vector.shape_cast %119 : vector<8x128xf32> to vector<1x8x128xf32>
    tpu.vector_store %arg10[%c0_71, %c0_72, %c0_73], %122 {strides = array<i32>} : memref<1x8x128xf32, #tpu.memory_space<vmem>>, vector<1x8x128xf32>,
    return
  }
  func.func @transform_0(%arg0: i32) -> (i32, i32, i32) {
    %c0_i32 = arith.constant 0 : i32
    %c0_i32_0 = arith.constant 0 : i32
    %c0_i32_1 = arith.constant 0 : i32
    return %arg0, %c0_i32, %c0_i32_0 : i32, i32, i32
  }
  func.func @transform_1(%arg0: i32) -> (i32, i32, i32) {
    %c0_i32 = arith.constant 0 : i32
    %c0_i32_0 = arith.constant 0 : i32
    %c0_i32_1 = arith.constant 0 : i32
    %c0_i32_2 = arith.constant 0 : i32
    return %c0_i32, %c0_i32_0, %c0_i32_1 : i32, i32, i32
  }
  func.func @transform_2(%arg0: i32) -> (i32, i32, i32) {
    %c0_i32 = arith.constant 0 : i32
    %c0_i32_0 = arith.constant 0 : i32
    %c0_i32_1 = arith.constant 0 : i32
    %c0_i32_2 = arith.constant 0 : i32
    return %c0_i32, %c0_i32_0, %c0_i32_1 : i32, i32, i32
  }
  func.func @transform_3(%arg0: i32) -> (i32, i32) {
    %c0_i32 = arith.constant 0 : i32
    %c0_i32_0 = arith.constant 0 : i32
    %c0_i32_1 = arith.constant 0 : i32
    return %c0_i32, %c0_i32_0 : i32, i32
  }
  func.func @transform_4(%arg0: i32) -> (i32, i32) {
    %c0_i32 = arith.constant 0 : i32
    %c0_i32_0 = arith.constant 0 : i32
    %c0_i32_1 = arith.constant 0 : i32
    return %c0_i32, %c0_i32_0 : i32, i32
  }
  func.func @transform_5(%arg0: i32) -> (i32, i32) {
    %c0_i32 = arith.constant 0 : i32
    %c0_i32_0 = arith.constant 0 : i32
    %c0_i32_1 = arith.constant 0 : i32
    return %c0_i32, %c0_i32_0 : i32, i32
  }
  func.func @transform_6(%arg0: i32) -> (i32, i32) {
    %c0_i32 = arith.constant 0 : i32
    %c0_i32_0 = arith.constant 0 : i32
    %c0_i32_1 = arith.constant 0 : i32
    return %c0_i32, %c0_i32_0 : i32, i32
  }
  func.func @transform_7(%arg0: i32) -> (i32, i32) {
    %c0_i32 = arith.constant 0 : i32
    %c0_i32_0 = arith.constant 0 : i32
    %c0_i32_1 = arith.constant 0 : i32
    return %c0_i32, %c0_i32_0 : i32, i32
  }
  func.func @transform_8(%arg0: i32) -> (i32, i32) {
    %c0_i32 = arith.constant 0 : i32
    %c0_i32_0 = arith.constant 0 : i32
    %c0_i32_1 = arith.constant 0 : i32
    return %c0_i32, %c0_i32_0 : i32, i32
  }
  func.func @transform_9(%arg0: i32) -> (i32, i32, i32) {
    %c0_i32 = arith.constant 0 : i32
    %c0_i32_0 = arith.constant 0 : i32
    %c0_i32_1 = arith.constant 0 : i32
    return %arg0, %c0_i32, %c0_i32_0 : i32, i32, i32
  }
  func.func @transform_10(%arg0: i32) -> (i32, i32, i32) {
    %c0_i32 = arith.constant 0 : i32
    %c0_i32_0 = arith.constant 0 : i32
    %c0_i32_1 = arith.constant 0 : i32
    %c0_i32_2 = arith.constant 0 : i32
    return %c0_i32, %c0_i32_0, %c0_i32_1 : i32, i32, i32
  }
  func.func @transform_11(%arg0: i32) -> (i32, i32, i32) {
    %c0_i32 = arith.constant 0 : i32
    %c0_i32_0 = arith.constant 0 : i32
    %c0_i32_1 = arith.constant 0 : i32
    %c0_i32_2 = arith.constant 0 : i32
    return %c0_i32, %c0_i32_0, %c0_i32_1 : i32, i32, i32
  }
}

</mosaic_0001>

<bundles_post_ra>
// kernel: _forward_padded.1
= control target key start
LH: loop header
LB: loop body
LE: loop exit
PB: predicated region body
PF: predicated region fallthrough
CT: control target
= control target key end

     0   :  { %17 = vsyncpa [#allocation5], 0  ;;  %s1854_s0 = inlined_call_operand.vmem [shape: f32[1,8,128], index: 0, kind: input, shape index: {}]   ;;  %s1855_s1 = inlined_call_operand.vmem [shape: f32[2,8,128], index: 1, kind: input, shape index: {}, may-alias: {1,10}]   ;;  %s1856_s2 = inlined_call_operand.vmem [shape: f32[2,8,128], index: 2, kind: input, shape index: {}, may-alias: {2,11}]   ;;  %s1857_s3 = inlined_call_operand.hbm [shape: bf16[256,512], index: 3, kind: input, shape index: {}]   ;;  %s1858_s4 = inlined_call_operand.vmem [shape: f32[8,512], index: 4, kind: input, shape index: {}]   ;;  %s1859_s5 = inlined_call_operand.hbm [shape: bf16[256,512], index: 5, kind: input, shape index: {}]   ;;  %s1860_s6 = inlined_call_operand.vmem [shape: f32[8,512], index: 6, kind: input, shape index: {}]   ;;  %s1861_s7 = inlined_call_operand.vmem [shape: bf16[128,128], index: 7, kind: input, shape index: {}]   ;;  %s1862_s8 = inlined_call_operand.vmem [shape: f32[8,128], index: 8, kind: input, shape index: {}]   ;;  %s1863_s9 = inlined_call_operand.vmem [shape: f32[1,8,128], index: 9, kind: output, shape index: {0}]   ;;  %s1864_s10 = inlined_call_operand.vmem [shape: f32[2,8,128], index: 10, kind: output, shape index: {1}, may-alias: {1,10}]   ;;  %s1865_s11 = inlined_call_operand.vmem [shape: f32[2,8,128], index: 11, kind: output, shape index: {2}, may-alias: {2,11}]  }
   0x1   :  { %18 = vsyncpa [#allocation7], 0  ;;  %s1683_s17 = smov [#allocation4]   ;;  %s1635_s21 = scalar_lea.hbm %s1857_s3, 8192 }
   0x2   :  { %s30_s18 = sshll.u32 %s1683_s17, 4  ;;  %p1636_p0 = scmp.ne.s32.totalorder %s1857_s3, %s1635_s21  ;;  %s31_s18 = int_to_ptr.vmem [resolvable:$true] %s30_s18 }
   0x3   :  { %p1639_p1 = scmp.lt.u32.totalorder %s1635_s21, %s1857_s3 }
   0x5   :  { %p1641_p2 = pnand %p1639_p1, %p1636_p0 }
   0x7   :  { %1644 = shalt.err (!%p1641_p2)
}
   0x8   :  { %s1645_s26 = scalar_lea.vmem %s31_s18, 8192  ;;  %p1650_p4 = scmp.lt.s32.totalorder %s31_s18, %s31_s18 }
   0x9   :  { %p1646_p3 = scmp.ne.s32.totalorder %s31_s18, %s1645_s26  ;;  %p1651_p5 = scmp.lt.s32.totalorder %s1645_s26, %s1645_s26 }
   0xb   :  { %p1652_p6 = por %p1651_p5, %p1650_p4 }
   0xd   :  { %p1653_p7 = pnand %p1652_p6, %p1646_p3 }
   0xf   :  { %1656 = shalt.err (!%p1653_p7)
}
  0x10   :  { %s1684_s27 = smov 256   ;;  %s1685_s28 = smov 16  }
  0x11   :  { %36 = dma.hbm_to_vmem [thread:$0]  %s1857_s3, 8192, %s31_s18, [#allocation5], %s1684_s27, %s1684_s27, %s1685_s28  }
  0x12   :  { %s1686_s12 = smov [#allocation6]   ;;  %s1657_s16 = scalar_lea.hbm %s1859_s5, 8192 }
  0x13   :  { %s44_s13 = sshll.u32 %s1686_s12, 4  ;;  %p1658_p8 = scmp.ne.s32.totalorder %s1859_s5, %s1657_s16  ;;  %s45_s13 = int_to_ptr.vmem [resolvable:$true] %s44_s13 }
  0x14   :  { %p1661_p9 = scmp.lt.u32.totalorder %s1657_s16, %s1859_s5 }
  0x16   :  { %p1663_p10 = pnand %p1661_p9, %p1658_p8 }
  0x18   :  { %1666 = shalt.err (!%p1663_p10)
}
  0x19   :  { %s1667_s22 = scalar_lea.vmem %s45_s13, 8192  ;;  %p1672_p12 = scmp.lt.s32.totalorder %s45_s13, %s45_s13 }
  0x1a   :  { %p1668_p11 = scmp.ne.s32.totalorder %s45_s13, %s1667_s22  ;;  %p1673_p13 = scmp.lt.s32.totalorder %s1667_s22, %s1667_s22 }
  0x1c   :  { %p1674_p0 = por %p1673_p13, %p1672_p12 }
  0x1e   :  { %p1675_p1 = pnand %p1674_p0, %p1668_p11 }
  0x20   :  { %1678 = shalt.err (!%p1675_p1)
}
  0x21   :  { %50 = dma.hbm_to_vmem [thread:$0]  %s1859_s5, 8192, %s45_s13, [#allocation7], %s1684_s27, %s1684_s27, %s1685_s28  }
  0x22   :  { %1679 = dma.done.wait [#allocation5], 8192  }
  0x23   :  { %1680 = vsyncadd [#allocation5], 4294959104 }
  0x24   :  { %1681 = dma.done.wait [#allocation7], 8192  }
  0x25   :  { %1682 = vsyncadd [#allocation7], 4294959104  ;;  %v1411_v0 = vld [vmem:[#allocation4 + $0x4] ss:$16 sps:$4 sm:$0xff]   ;;  %v1413_v1 = vld [vmem:[#allocation4] ss:$16 sps:$4 sm:$0xff]  }
  0x26   :  { %479 = vmatprep.subr.bf16.mxu0 %v1411_v0  ;;  %v1414_v2 = vld [vmem:[#allocation4 + $0x24] ss:$16 sps:$4 sm:$0xff]   ;;  %v1416_v3 = vld [vmem:[#allocation4 + $0xc] ss:$16 sps:$4 sm:$0xff]   ;;  %v1418_v4 = vld [vmem:[#allocation4 + $0x20] ss:$16 sps:$4 sm:$0xff]  }
  0x27   :  { %480 = vmatpush1.bf16.msra.mxu0 %v1413_v1  ;;  %v1419_v5 = vld [vmem:[#allocation4 + $0x8] ss:$16 sps:$4 sm:$0xff]   ;;  %v1420_v6 = vld [vmem:[#allocation4 + $0x44] ss:$16 sps:$4 sm:$0xff]   ;;  %520 = vmatprep.subr.bf16.mxu1 %v1416_v3  ;;  %v1422_v7 = vld [vmem:[#allocation4 + $0x2c] ss:$16 sps:$4 sm:$0xff]  }
  0x28   :  { %481 = vmatprep.subr.bf16.mxu0 %v1414_v2  ;;  %521 = vmatpush1.bf16.msra.mxu1 %v1419_v5  ;;  %v1425_v8 = vld [vmem:[#allocation4 + $0x28] ss:$16 sps:$4 sm:$0xff]   ;;  %v1424_v9 = vld [vmem:[#allocation4 + $0x40] ss:$16 sps:$4 sm:$0xff]   ;;  %v1426_v10 = vld [vmem:[#allocation4 + $0x64] ss:$16 sps:$4 sm:$0xff]  }
  0x29   :  { %522 = vmatprep.subr.bf16.mxu1 %v1422_v7  ;;  %v1428_v11 = vld [vmem:[#allocation4 + $0x4c] ss:$16 sps:$4 sm:$0xff]   ;;  %v1431_v12 = vld [vmem:[#allocation4 + $0x48] ss:$16 sps:$4 sm:$0xff]   ;;  %v1430_v13 = vld [vmem:[#allocation4 + $0x60] ss:$16 sps:$4 sm:$0xff]  }
  0x2a   :  { %v1434_v14 = vld [vmem:[#allocation4 + $0x6c] ss:$16 sps:$4 sm:$0xff]   ;;  %v1432_v15 = vld [vmem:[#allocation4 + $0x84] ss:$16 sps:$4 sm:$0xff]   ;;  %v1436_v16 = vld [vmem:[#allocation4 + $0x80] ss:$16 sps:$4 sm:$0xff]  }
  0x2b   :  { %482 = vmatpush1.bf16.msra.mxu0 %v1418_v4  ;;  %v1437_v17 = vld [vmem:[#allocation4 + $0x68] ss:$16 sps:$4 sm:$0xff]   ;;  %v1440_v18 = vld [vmem:[#allocation4 + $0x8c] ss:$16 sps:$4 sm:$0xff]   ;;  %v1438_v19 = vld [vmem:[#allocation4 + $0xa4] ss:$16 sps:$4 sm:$0xff]  }
  0x2c   :  { %483 = vmatprep.subr.bf16.mxu0 %v1420_v6  ;;  %523 = vmatpush1.bf16.msra.mxu1 %v1425_v8  ;;  %v1443_v20 = vld [vmem:[#allocation4 + $0x88] ss:$16 sps:$4 sm:$0xff]   ;;  %v1442_v21 = vld [vmem:[#allocation4 + $0xa0] ss:$16 sps:$4 sm:$0xff]   ;;  %v1446_v22 = vld [vmem:[#allocation4 + $0xac] ss:$16 sps:$4 sm:$0xff]  }
  0x2d   :  { %524 = vmatprep.subr.bf16.mxu1 %v1428_v11  ;;  %v1444_v23 = vld [vmem:[#allocation4 + $0xc4] ss:$16 sps:$4 sm:$0xff]   ;;  %v1448_v24 = vld [vmem:[#allocation4 + $0xc0] ss:$16 sps:$4 sm:$0xff]   ;;  %v1449_v25 = vld [vmem:[#allocation4 + $0xa8] ss:$16 sps:$4 sm:$0xff]  }
  0x2e   :  { %v1452_v26 = vld [vmem:[#allocation4 + $0xcc] ss:$16 sps:$4 sm:$0xff]   ;;  %v1450_v27 = vld [vmem:[#allocation4 + $0xe4] ss:$16 sps:$4 sm:$0xff]   ;;  %v1455_v28 = vld [vmem:[#allocation4 + $0xc8] ss:$16 sps:$4 sm:$0xff]  }
  0x2f   :  { %484 = vmatpush1.bf16.msra.mxu0 %v1424_v9  ;;  %v1454_v29 = vld [vmem:[#allocation4 + $0xe0] ss:$16 sps:$4 sm:$0xff]   ;;  %v1458_v30 = vld [vmem:[#allocation4 + $0xec] ss:$16 sps:$4 sm:$0xff]   ;;  %v1456_v31 = vld [vmem:[#allocation4 + $0x104] ss:$16 sps:$4 sm:$0xff]  }
  0x30   :  { %485 = vmatprep.subr.bf16.mxu0 %v1426_v10  ;;  %525 = vmatpush1.bf16.msra.mxu1 %v1431_v12  ;;  %v1460_v32 = vld [vmem:[#allocation4 + $0x100] ss:$16 sps:$4 sm:$0xff]   ;;  %v1461_v33 = vld [vmem:[#allocation4 + $0xe8] ss:$16 sps:$4 sm:$0xff]   ;;  %v1464_v34 = vld [vmem:[#allocation4 + $0x10c] ss:$16 sps:$4 sm:$0xff]  }
  0x31   :  { %526 = vmatprep.subr.bf16.mxu1 %v1434_v14  ;;  %v1462_v35 = vld [vmem:[#allocation4 + $0x124] ss:$16 sps:$4 sm:$0xff]   ;;  %v1467_v36 = vld [vmem:[#allocation4 + $0x108] ss:$16 sps:$4 sm:$0xff]   ;;  %v1466_v37 = vld [vmem:[#allocation4 + $0x120] ss:$16 sps:$4 sm:$0xff]  }
  0x32   :  { %v1470_v38 = vld [vmem:[#allocation4 + $0x12c] ss:$16 sps:$4 sm:$0xff]   ;;  %v1468_v39 = vld [vmem:[#allocation4 + $0x144] ss:$16 sps:$4 sm:$0xff]   ;;  %v1472_v40 = vld [vmem:[#allocation4 + $0x140] ss:$16 sps:$4 sm:$0xff]  }
  0x33   :  { %486 = vmatpush1.bf16.msra.mxu0 %v1430_v13  ;;  %v1473_v41 = vld [vmem:[#allocation4 + $0x128] ss:$16 sps:$4 sm:$0xff]   ;;  %v1476_v42 = vld [vmem:[#allocation4 + $0x14c] ss:$16 sps:$4 sm:$0xff]   ;;  %v1474_v43 = vld [vmem:[#allocation4 + $0x164] ss:$16 sps:$4 sm:$0xff]  }
  0x34   :  { %487 = vmatprep.subr.bf16.mxu0 %v1432_v15  ;;  %527 = vmatpush1.bf16.msra.mxu1 %v1437_v17  ;;  %v1478_v44 = vld [vmem:[#allocation4 + $0x160] ss:$16 sps:$4 sm:$0xff]   ;;  %v1479_v46 = vld [vmem:[#allocation4 + $0x148] ss:$16 sps:$4 sm:$0xff]   ;;  %v1482_v48 = vld [vmem:[#allocation4 + $0x16c] ss:$16 sps:$4 sm:$0xff]  }
  0x35   :  { %528 = vmatprep.subr.bf16.mxu1 %v1440_v18  ;;  %v68_v45 = vld [vmem:[%s1855_s1] sm:$0xff]  ;;  %v1485_v51 = vld [vmem:[#allocation4 + $0x168] ss:$16 sps:$4 sm:$0xff]   ;;  %v1488_v52 = vld [vmem:[#allocation4 + $0x18c] ss:$16 sps:$4 sm:$0xff]   ;;  %vm1688_vm0 = vmmov 0  }
  0x36   :  { %v1373_v47 = vpack.c.bf16 %v68_v45, %v68_v45  ;;  %v1480_v49 = vld [vmem:[#allocation4 + $0x184] ss:$16 sps:$4 sm:$0xff]   ;;  %v1484_v50 = vld [vmem:[#allocation4 + $0x180] ss:$16 sps:$4 sm:$0xff]   ;;  %v1491_v55 = vld [vmem:[#allocation4 + $0x188] ss:$16 sps:$4 sm:$0xff]  }
  0x37   :  { %488 = vmatpush1.bf16.msra.mxu0 %v1436_v16  ;;  %v1486_v53 = vld [vmem:[#allocation4 + $0x1a4] ss:$16 sps:$4 sm:$0xff]   ;;  %v1490_v54 = vld [vmem:[#allocation4 + $0x1a0] ss:$16 sps:$4 sm:$0xff]   ;;  %v1494_v56 = vld [vmem:[#allocation4 + $0x1ac] ss:$16 sps:$4 sm:$0xff]  }
  0x38   :  { %489 = vmatprep.subr.bf16.mxu0 %v1438_v19  ;;  %529 = vmatpush1.bf16.msra.mxu1 %v1443_v20  ;;  %v1492_v57 = vld [vmem:[#allocation4 + $0x1c4] ss:$16 sps:$4 sm:$0xff]   ;;  %v1496_v58 = vld [vmem:[#allocation4 + $0x1c0] ss:$16 sps:$4 sm:$0xff]   ;;  %v1497_v59 = vld [vmem:[#allocation4 + $0x1a8] ss:$16 sps:$4 sm:$0xff]  }
  0x39   :  { %530 = vmatprep.subr.bf16.mxu1 %v1446_v22  ;;  %511 = vmatprep.mubr.bf16.mxu0 %v1373_v47  ;;  %v1500_v60 = vld [vmem:[#allocation4 + $0x1cc] ss:$16 sps:$4 sm:$0xff]   ;;  %v1498_v61 = vld [vmem:[#allocation4 + $0x1e4] ss:$16 sps:$4 sm:$0xff]   ;;  %v1502_v62 = vld [vmem:[#allocation4 + $0x1e0] ss:$16 sps:$4 sm:$0xff]  }
  0x3a   :  { %552 = vmatprep.mubr.bf16.mxu1 %v1373_v47  ;;  %v1503_v63 = vld [vmem:[#allocation4 + $0x1c8] ss:$16 sps:$4 sm:$0xff]   ;;  %v78_v0 = vld [vmem:[%s1854_s0] sm:$0xff]  ;;  %v1504_v1 = vld [vmem:[#allocation4 + $0x1ec] ss:$16 sps:$4 sm:$0xff]  }
  0x3b   :  { %490 = vmatpush1.bf16.msra.mxu0 %v1442_v21  ;;  %v1509_v2 = vld [vmem:[#allocation6 + $0x4] ss:$16 sps:$4 sm:$0xff]   ;;  %v1506_v3 = vld [vmem:[#allocation4 + $0x1e8] ss:$16 sps:$4 sm:$0xff]   ;;  %v1507_v4 = vld [vmem:[#allocation6] ss:$16 sps:$4 sm:$0xff]   ;;  %v1372_v6 = vpack.c.bf16 %v78_v0, %v78_v0 }
  0x3c   :  { %491 = vmatprep.subr.bf16.mxu0 %v1444_v23  ;;  %531 = vmatpush1.bf16.msra.mxu1 %v1449_v25  ;;  %v1512_v5 = vld [vmem:[#allocation6 + $0xc] ss:$16 sps:$4 sm:$0xff]   ;;  %v1515_v7 = vld [vmem:[#allocation6 + $0x24] ss:$16 sps:$4 sm:$0xff]   ;;  %v1510_v8 = vld [vmem:[#allocation6 + $0x8] ss:$16 sps:$4 sm:$0xff]  }
  0x3d   :  { %532 = vmatprep.subr.bf16.mxu1 %v1452_v26  ;;  %v1513_v9 = vld [vmem:[#allocation6 + $0x20] ss:$16 sps:$4 sm:$0xff]   ;;  %v1518_v10 = vld [vmem:[#allocation6 + $0x2c] ss:$16 sps:$4 sm:$0xff]   ;;  %v1521_v11 = vld [vmem:[#allocation6 + $0x44] ss:$16 sps:$4 sm:$0xff]  }
  0x3e   :  { %v1516_v12 = vld [vmem:[#allocation6 + $0x28] ss:$16 sps:$4 sm:$0xff]   ;;  %v1519_v13 = vld [vmem:[#allocation6 + $0x40] ss:$16 sps:$4 sm:$0xff]   ;;  %v1524_v14 = vld [vmem:[#allocation6 + $0x4c] ss:$16 sps:$4 sm:$0xff]  }
  0x3f   :  { %492 = vmatpush1.bf16.msra.mxu0 %v1448_v24  ;;  %v1527_v15 = vld [vmem:[#allocation6 + $0x64] ss:$16 sps:$4 sm:$0xff]   ;;  %v1522_v16 = vld [vmem:[#allocation6 + $0x48] ss:$16 sps:$4 sm:$0xff]   ;;  %v1525_v17 = vld [vmem:[#allocation6 + $0x60] ss:$16 sps:$4 sm:$0xff]  }
  0x40   :  { %493 = vmatprep.subr.bf16.mxu0 %v1450_v27  ;;  %533 = vmatpush1.bf16.msra.mxu1 %v1455_v28  ;;  %v1530_v18 = vld [vmem:[#allocation6 + $0x6c] ss:$16 sps:$4 sm:$0xff]   ;;  %v1533_v19 = vld [vmem:[#allocation6 + $0x84] ss:$16 sps:$4 sm:$0xff]   ;;  %v1528_v20 = vld [vmem:[#allocation6 + $0x68] ss:$16 sps:$4 sm:$0xff]  }
  0x41   :  { %534 = vmatprep.subr.bf16.mxu1 %v1458_v30  ;;  %v1531_v21 = vld [vmem:[#allocation6 + $0x80] ss:$16 sps:$4 sm:$0xff]   ;;  %v1536_v22 = vld [vmem:[#allocation6 + $0x8c] ss:$16 sps:$4 sm:$0xff]   ;;  %v1539_v23 = vld [vmem:[#allocation6 + $0xa4] ss:$16 sps:$4 sm:$0xff]  }
  0x42   :  { %v1534_v24 = vld [vmem:[#allocation6 + $0x88] ss:$16 sps:$4 sm:$0xff]   ;;  %v1537_v25 = vld [vmem:[#allocation6 + $0xa0] ss:$16 sps:$4 sm:$0xff]   ;;  %v1542_v26 = vld [vmem:[#allocation6 + $0xac] ss:$16 sps:$4 sm:$0xff]  }
  0x43   :  { %494 = vmatpush1.bf16.msra.mxu0 %v1454_v29  ;;  %v1540_v27 = vld [vmem:[#allocation6 + $0xa8] ss:$16 sps:$4 sm:$0xff]   ;;  %v1545_v28 = vld [vmem:[#allocation6 + $0xc4] ss:$16 sps:$4 sm:$0xff]   ;;  %v1548_v29 = vld [vmem:[#allocation6 + $0xcc] ss:$16 sps:$4 sm:$0xff]  }
  0x44   :  { %495 = vmatprep.subr.bf16.mxu0 %v1456_v31  ;;  %535 = vmatpush1.bf16.msra.mxu1 %v1461_v33  ;;  %v1543_v30 = vld [vmem:[#allocation6 + $0xc0] ss:$16 sps:$4 sm:$0xff]   ;;  %v1546_v31 = vld [vmem:[#allocation6 + $0xc8] ss:$16 sps:$4 sm:$0xff]   ;;  %v1554_v33 = vld [vmem:[#allocation6 + $0xec] ss:$16 sps:$4 sm:$0xff]  }
  0x45   :  { %536 = vmatprep.subr.bf16.mxu1 %v1464_v34  ;;  %v1549_v34 = vld [vmem:[#allocation6 + $0xe0] ss:$16 sps:$4 sm:$0xff]   ;;  %v1572_v45 = vld [vmem:[#allocation6 + $0x14c] ss:$16 sps:$4 sm:$0xff]   ;;  %v1570_v47 = vld [vmem:[#allocation6 + $0x148] ss:$16 sps:$4 sm:$0xff]  }
  0x46   :  { %v1599_v0 = vld [vmem:[#allocation6 + $0x1e4] ss:$16 sps:$4 sm:$0xff]  }
  0x47   :  { %496 = vmatpush1.bf16.msra.mxu0 %v1460_v32  ;;  %v1551_v32 = vld [vmem:[#allocation6 + $0xe4] ss:$16 sps:$4 sm:$0xff]  }
  0x48   :  { %497 = vmatprep.subr.bf16.mxu0 %v1462_v35  ;;  %537 = vmatpush1.bf16.msra.mxu1 %v1467_v36  ;;  %v1552_v35 = vld [vmem:[#allocation6 + $0xe8] ss:$16 sps:$4 sm:$0xff]   ;;  %v1557_v36 = vld [vmem:[#allocation6 + $0x104] ss:$16 sps:$4 sm:$0xff]  }
  0x49   :  { %538 = vmatprep.subr.bf16.mxu1 %v1470_v38  ;;  %v1555_v38 = vld [vmem:[#allocation6 + $0x100] ss:$16 sps:$4 sm:$0xff]  }
  0x4b   :  { %498 = vmatpush1.bf16.msra.mxu0 %v1466_v37  ;;  %v1560_v37 = vld [vmem:[#allocation6 + $0x10c] ss:$16 sps:$4 sm:$0xff]  }
  0x4c   :  { %499 = vmatprep.subr.bf16.mxu0 %v1468_v39  ;;  %539 = vmatpush1.bf16.msra.mxu1 %v1473_v41  ;;  %v1558_v39 = vld [vmem:[#allocation6 + $0x108] ss:$16 sps:$4 sm:$0xff]   ;;  %v1566_v41 = vld [vmem:[#allocation6 + $0x12c] ss:$16 sps:$4 sm:$0xff]  }
  0x4d   :  { %540 = vmatprep.subr.bf16.mxu1 %v1476_v42  ;;  %v1561_v42 = vld [vmem:[#allocation6 + $0x120] ss:$16 sps:$4 sm:$0xff]  }
  0x4f   :  { %500 = vmatpush1.bf16.msra.mxu0 %v1472_v40  ;;  %v1563_v40 = vld [vmem:[#allocation6 + $0x124] ss:$16 sps:$4 sm:$0xff]  }
  0x50   :  { %501 = vmatprep.subr.bf16.mxu0 %v1474_v43  ;;  %541 = vmatpush1.bf16.msra.mxu1 %v1479_v46  ;;  %v1564_v43 = vld [vmem:[#allocation6 + $0x128] ss:$16 sps:$4 sm:$0xff]   ;;  %v1567_v46 = vld [vmem:[#allocation6 + $0x140] ss:$16 sps:$4 sm:$0xff]  }
  0x51   :  { %542 = vmatprep.subr.bf16.mxu1 %v1482_v48  ;;  %v1575_v48 = vld [vmem:[#allocation6 + $0x164] ss:$16 sps:$4 sm:$0xff]  }
  0x53   :  { %502 = vmatpush1.bf16.msra.mxu0 %v1478_v44  ;;  %v1569_v44 = vld [vmem:[#allocation6 + $0x144] ss:$16 sps:$4 sm:$0xff]  }
  0x54   :  { %503 = vmatprep.subr.bf16.mxu0 %v1480_v49  ;;  %543 = vmatpush1.bf16.msra.mxu1 %v1485_v51  ;;  %v1578_v49 = vld [vmem:[#allocation6 + $0x16c] ss:$16 sps:$4 sm:$0xff]   ;;  %v1576_v51 = vld [vmem:[#allocation6 + $0x168] ss:$16 sps:$4 sm:$0xff]  }
  0x55   :  { %544 = vmatprep.subr.bf16.mxu1 %v1488_v52  ;;  %v1581_v52 = vld [vmem:[#allocation6 + $0x184] ss:$16 sps:$4 sm:$0xff]  }
  0x57   :  { %504 = vmatpush1.bf16.msra.mxu0 %v1484_v50  ;;  %v1573_v50 = vld [vmem:[#allocation6 + $0x160] ss:$16 sps:$4 sm:$0xff]  }
  0x58   :  { %505 = vmatprep.subr.bf16.mxu0 %v1486_v53  ;;  %545 = vmatpush1.bf16.msra.mxu1 %v1491_v55  ;;  %v1584_v53 = vld [vmem:[#allocation6 + $0x18c] ss:$16 sps:$4 sm:$0xff]   ;;  %v1582_v55 = vld [vmem:[#allocation6 + $0x188] ss:$16 sps:$4 sm:$0xff]  }
  0x59   :  { %546 = vmatprep.subr.bf16.mxu1 %v1494_v56  ;;  %v1587_v56 = vld [vmem:[#allocation6 + $0x1a4] ss:$16 sps:$4 sm:$0xff]  }
  0x5b   :  { %506 = vmatpush1.bf16.msra.mxu0 %v1490_v54  ;;  %v1579_v54 = vld [vmem:[#allocation6 + $0x180] ss:$16 sps:$4 sm:$0xff]  }
  0x5c   :  { %507 = vmatprep.subr.bf16.mxu0 %v1492_v57  ;;  %547 = vmatpush1.bf16.msra.mxu1 %v1497_v59  ;;  %v1590_v57 = vld [vmem:[#allocation6 + $0x1ac] ss:$16 sps:$4 sm:$0xff]   ;;  %v1588_v59 = vld [vmem:[#allocation6 + $0x1a8] ss:$16 sps:$4 sm:$0xff]  }
  0x5d   :  { %548 = vmatprep.subr.bf16.mxu1 %v1500_v60  ;;  %v1593_v60 = vld [vmem:[#allocation6 + $0x1c4] ss:$16 sps:$4 sm:$0xff]  }
  0x5f   :  { %508 = vmatpush1.bf16.msra.mxu0 %v1496_v58  ;;  %v1585_v58 = vld [vmem:[#allocation6 + $0x1a0] ss:$16 sps:$4 sm:$0xff]  }
  0x60   :  { %509 = vmatprep.subr.bf16.mxu0 %v1498_v61  ;;  %549 = vmatpush1.bf16.msra.mxu1 %v1503_v63  ;;  %v1596_v61 = vld [vmem:[#allocation6 + $0x1cc] ss:$16 sps:$4 sm:$0xff]   ;;  %v1594_v63 = vld [vmem:[#allocation6 + $0x1c8] ss:$16 sps:$4 sm:$0xff]  }
  0x61   :  { %550 = vmatprep.subr.bf16.mxu1 %v1504_v1  ;;  %v1602_v1 = vld [vmem:[#allocation6 + $0x1ec] ss:$16 sps:$4 sm:$0xff]  }
  0x63   :  { %510 = vmatpush1.bf16.msra.mxu0 %v1502_v62  ;;  %v1591_v62 = vld [vmem:[#allocation6 + $0x1c0] ss:$16 sps:$4 sm:$0xff]  }
  0x64   :  { %985 = vmatprep.subr.bf16.mxu0 %v1509_v2  ;;  %551 = vmatpush1.bf16.msra.mxu1 %v1506_v3  ;;  %v1597_v2 = vld [vmem:[#allocation6 + $0x1e0] ss:$16 sps:$4 sm:$0xff]   ;;  %v1600_v3 = vld [vmem:[#allocation6 + $0x1e8] ss:$16 sps:$4 sm:$0xff]  }
  0x65   :  { %1026 = vmatprep.subr.bf16.mxu1 %v1512_v5 }
  0x66   :  { %512 = vmatmul.mubr.bf16.vlgmr.msra.gmra.mrb[0].mxu0 %v1372_v6 }
  0x67   :  { %986 = vmatpush1.bf16.msra.mxu0 %v1507_v4  ;;  %553 = vmatmul.mubr.bf16.vlgmr.msra.gmra.mrb[0].mxu1 %v1372_v6  ;;  %v69_v4 = vld [vmem:[%s1855_s1 + $0x8] sm:$0xff]  ;;  %v148_v6 = vld [vmem:[%s1858_s4] sm:$0xff] }
  0x68   :  { %987 = vmatprep.subr.bf16.mxu0 %v1515_v7  ;;  %1027 = vmatpush1.bf16.msra.mxu1 %v1510_v8  ;;  %v1375_v5 = vpack.c.bf16 %v69_v4, %v69_v4  ;;  %v149_v7 = vld [vmem:[%s1858_s4 + $0x8] sm:$0xff] }
  0x69   :  { %1028 = vmatprep.subr.bf16.mxu1 %v1518_v10 }
  0x6a   :  { %1017 = vmatprep.mubr.bf16.mxu0 %v1375_v5  ;;  %1058 = vmatprep.mubr.bf16.mxu1 %v1375_v5 }
  0x6b   :  { %988 = vmatpush1.bf16.msra.mxu0 %v1513_v9 }
  0x6c   :  { %989 = vmatprep.subr.bf16.mxu0 %v1521_v11  ;;  %1029 = vmatpush1.bf16.msra.mxu1 %v1516_v12  ;;  %v150_v11 = vld [vmem:[%s1858_s4 + $0x10] sm:$0xff] }
  0x6d   :  { %1030 = vmatprep.subr.bf16.mxu1 %v1524_v14 }
  0x6f   :  { %990 = vmatpush1.bf16.msra.mxu0 %v1519_v13 }
  0x70   :  { %991 = vmatprep.subr.bf16.mxu0 %v1527_v15  ;;  %1031 = vmatpush1.bf16.msra.mxu1 %v1522_v16 }
  0x71   :  { %1032 = vmatprep.subr.bf16.mxu1 %v1530_v18 }
  0x73   :  { %992 = vmatpush1.bf16.msra.mxu0 %v1525_v17 }
  0x74   :  { %993 = vmatprep.subr.bf16.mxu0 %v1533_v19  ;;  %1033 = vmatpush1.bf16.msra.mxu1 %v1528_v20 }
  0x75   :  { %1034 = vmatprep.subr.bf16.mxu1 %v1536_v22 }
  0x77   :  { %994 = vmatpush1.bf16.msra.mxu0 %v1531_v21  ;;  %v151_v21 = vld [vmem:[%s1858_s4 + $0x18] sm:$0xff] }
  0x78   :  { %995 = vmatprep.subr.bf16.mxu0 %v1539_v23  ;;  %1035 = vmatpush1.bf16.msra.mxu1 %v1534_v24 }
  0x79   :  { %1036 = vmatprep.subr.bf16.mxu1 %v1542_v26 }
  0x7b   :  { %996 = vmatpush1.bf16.msra.mxu0 %v1537_v25 }
  0x7c   :  { %1037 = vmatpush1.bf16.msra.mxu1 %v1540_v27  ;;  %997 = vmatprep.subr.bf16.mxu0 %v1545_v28 }
  0x7d   :  { %1038 = vmatprep.subr.bf16.mxu1 %v1548_v29 }
  0x7f   :  { %998 = vmatpush1.bf16.msra.mxu0 %v1543_v30 }
  0x80   :  { %1039 = vmatpush1.bf16.msra.mxu1 %v1546_v31  ;;  %999 = vmatprep.subr.bf16.mxu0 %v1551_v32  ;;  %v72_v31 = vld [vmem:[%s1856_s2] sm:$0xff] }
  0x81   :  { %1040 = vmatprep.subr.bf16.mxu1 %v1554_v33 }
  0x83   :  { %1000 = vmatpush1.bf16.msra.mxu0 %v1549_v34 }
  0x84   :  { %1041 = vmatpush1.bf16.msra.mxu1 %v1552_v35  ;;  %1001 = vmatprep.subr.bf16.mxu0 %v1557_v36 }
  0x85   :  { %1042 = vmatprep.subr.bf16.mxu1 %v1560_v37 }
  0x87   :  { %1002 = vmatpush1.bf16.msra.mxu0 %v1555_v38 }
  0x88   :  { %1043 = vmatpush1.bf16.msra.mxu1 %v1558_v39  ;;  %1003 = vmatprep.subr.bf16.mxu0 %v1563_v40 }
  0x89   :  { %1044 = vmatprep.subr.bf16.mxu1 %v1566_v41 }
  0x8b   :  { %1004 = vmatpush1.bf16.msra.mxu0 %v1561_v42  ;;  %v1603_v42 = vld [vmem:[%s1861_s7] sm:$0xff]  }
  0x8c   :  { %1045 = vmatpush1.bf16.msra.mxu1 %v1564_v43  ;;  %1005 = vmatprep.subr.bf16.mxu0 %v1569_v44  ;;  %v1687_v43 = vmov 0.0   ;;  %v1604_v44 = vld [vmem:[%s1861_s7 + $0x8] sm:$0xff]  }
  0x8d   :  { %1046 = vmatprep.subr.bf16.mxu1 %v1572_v45  ;;  %v1605_v45 = vld [vmem:[%s1861_s7 + $0x10] sm:$0xff]  }
  0x8f   :  { %1006 = vmatpush1.bf16.msra.mxu0 %v1567_v46  ;;  %v1606_v46 = vld [vmem:[%s1861_s7 + $0x18] sm:$0xff]  }
  0x90   :  { %1047 = vmatpush1.bf16.msra.mxu1 %v1570_v47  ;;  %1007 = vmatprep.subr.bf16.mxu0 %v1575_v48  ;;  %v1607_v47 = vld [vmem:[%s1861_s7 + $0x20] sm:$0xff]   ;;  %v1608_v48 = vld [vmem:[%s1861_s7 + $0x28] sm:$0xff]  }
  0x91   :  { %1048 = vmatprep.subr.bf16.mxu1 %v1578_v49  ;;  %v1609_v49 = vld [vmem:[%s1861_s7 + $0x30] sm:$0xff]  }
  0x93   :  { %1008 = vmatpush1.bf16.msra.mxu0 %v1573_v50  ;;  %v1610_v50 = vld [vmem:[%s1861_s7 + $0x38] sm:$0xff]  }
  0x94   :  { %1049 = vmatpush1.bf16.msra.mxu1 %v1576_v51  ;;  %1009 = vmatprep.subr.bf16.mxu0 %v1581_v52  ;;  %v654_v51 = vld [vmem:[%s1860_s6] sm:$0xff]  ;;  %v655_v52 = vld [vmem:[%s1860_s6 + $0x8] sm:$0xff] }
  0x95   :  { %1050 = vmatprep.subr.bf16.mxu1 %v1584_v53 }
  0x97   :  { %1010 = vmatpush1.bf16.msra.mxu0 %v1579_v54 }
  0x98   :  { %1051 = vmatpush1.bf16.msra.mxu1 %v1582_v55  ;;  %1011 = vmatprep.subr.bf16.mxu0 %v1587_v56 }
  0x99   :  { %1052 = vmatprep.subr.bf16.mxu1 %v1590_v57 }
  0x9b   :  { %1012 = vmatpush1.bf16.msra.mxu0 %v1585_v58  ;;  %v656_v58 = vld [vmem:[%s1860_s6 + $0x10] sm:$0xff] }
  0x9c   :  { %1053 = vmatpush1.bf16.msra.mxu1 %v1588_v59  ;;  %1013 = vmatprep.subr.bf16.mxu0 %v1593_v60 }
  0x9d   :  { %1054 = vmatprep.subr.bf16.mxu1 %v1596_v61 }
  0x9f   :  { %1014 = vmatpush1.bf16.msra.mxu0 %v1591_v62 }
  0xa0   :  { %1055 = vmatpush1.bf16.msra.mxu1 %v1594_v63  ;;  %1015 = vmatprep.subr.bf16.mxu0 %v1599_v0 }
  0xa1   :  { %1056 = vmatprep.subr.bf16.mxu1 %v1602_v1 }
  0xa3   :  { %1016 = vmatpush1.bf16.msra.mxu0 %v1597_v2 }
  0xa4   :  { %1057 = vmatpush1.bf16.msra.mxu1 %v1600_v3  ;;  %1385 = vmatprep.subr.bf16.mxu0 %v1687_v43  ;;  %v657_v3 = vld [vmem:[%s1860_s6 + $0x18] sm:$0xff] }
 0x139   :  { %v513_v8 = vpop.f32.mrb[0].mxu0 }
 0x13a   :  { %v514_v9 = vadd.f32 %v513_v8, %v148_v6  ;;  %v515_v10 = vpop.f32.mrb[1].mxu0  ;;  %v554_v16 = vpop.f32.mrb[0].mxu1 }
 0x13b   :  { %v516_v12 = vadd.f32 %v515_v10, %v149_v7  ;;  %v517_v13 = vpop.f32.mrb[2].mxu0  ;;  %v555_v18 = vadd.f32 %v554_v16, %v150_v11  ;;  %v556_v19 = vpop.f32.mrb[1].mxu1 }
 0x13c   :  { %v561_v14 = vmul.f32 0.5, %v514_v9  ;;  %v518_v15 = vpop.f32.mrb[3].mxu0  ;;  %v558_v20 = vpop.f32.mrb[2].mxu1  ;;  %v557_v23 = vadd.f32 %v556_v19, %v151_v21 }
 0x13d   :  { %v565_v17 = vmul.f32 0.5, %v516_v12  ;;  %v559_v22 = vpop.f32.mrb[3].mxu1 }
 0x13e   :  { %1611 = vtanh.f32 %v561_v14  ;;  %v570_v24 = vmul.f32 0.5, %v557_v23  ;;  %v1104_v23 = vld [vmem:[%s1862_s8] sm:$0xff] }
 0x13f   :  { %1613 = vtanh.f32 %v565_v17 }
 0x140   :  { %1615 = vtanh.f32 %v555_v18 }
 0x141   :  { %1617 = vtanh.f32 %v570_v24 }
 0x148   :  { %v1612_v25 = vpop.eup %1611 }
 0x149   :  { %v1614_v26 = vpop.eup %1613  ;;  %v563_v27 = vmul.f32 0.5, %v1612_v25 }
 0x14a   :  { %v1616_v28 = vpop.eup %1615  ;;  %v567_v29 = vmul.f32 0.5, %v1614_v26 }
 0x14b   :  { %v564_v30 = vadd.f32 0.5, %v563_v27  ;;  %v1618_v36 = vpop.eup %1617 }
 0x14c   :  { %v568_v32 = vadd.f32 0.5, %v567_v29  ;;  %v572_v37 = vmul.f32 0.5, %v1618_v36 }
 0x14d   :  { %v575_v33 = vmul.f32 %v1616_v28, %v564_v30 }
 0x14e   :  { %v574_v34 = vmul.f32 %v568_v32, %v72_v31  ;;  %v573_v38 = vadd.f32 0.5, %v572_v37 }
 0x150   :  { %v576_v35 = vadd.f32 %v575_v33, %v574_v34 }
 0x152   :  { %1619 = vtanh.f32 %v576_v35  ;;  %580 = vst [vmem:[%s1865_s11] sm:$0xff] %v576_v35 }
 0x159   :  { %v73_v11 = vld [vmem:[%s1856_s2 + $0x8] sm:$0xff] }
 0x15c   :  { %v1620_v39 = vpop.eup %1619 }
 0x15d   :  { %v578_v40 = vmul.f32 %v1620_v39, %v573_v38 }
 0x15f   :  { %579 = vst [vmem:[%s1864_s10] sm:$0xff] %v578_v40  ;;  %v1374_v41 = vpack.c.bf16 %v578_v40, %v578_v40 }
 0x161   :  { %1018 = vmatmul.mubr.bf16.vlgmr.msra.gmra.mrb[4].mxu0 %v1374_v41  ;;  %1059 = vmatmul.mubr.bf16.vlgmr.msra.gmra.mrb[4].mxu1 %v1374_v41 }
 0x162   :  { %1386 = vmatpush3.bf16.msra.mxu0 %v1603_v42  ;;  %1401 = vmatprep.mubr.msk.bf16.mxu0 %vm1688_vm0, %v1687_v43 }
 0x163   :  { %1387 = vmatprep.subr.bf16.mxu0 %v1687_v43 }
 0x166   :  { %1388 = vmatpush3.bf16.msra.mxu0 %v1604_v44 }
 0x167   :  { %1389 = vmatprep.subr.bf16.mxu0 %v1687_v43 }
 0x16a   :  { %1390 = vmatpush3.bf16.msra.mxu0 %v1605_v45 }
 0x16b   :  { %1391 = vmatprep.subr.bf16.mxu0 %v1687_v43 }
 0x16e   :  { %1392 = vmatpush3.bf16.msra.mxu0 %v1606_v46 }
 0x16f   :  { %1393 = vmatprep.subr.bf16.mxu0 %v1687_v43 }
 0x172   :  { %1394 = vmatpush3.bf16.msra.mxu0 %v1607_v47 }
 0x173   :  { %1395 = vmatprep.subr.bf16.mxu0 %v1687_v43 }
 0x176   :  { %1396 = vmatpush3.bf16.msra.mxu0 %v1608_v48 }
 0x177   :  { %1397 = vmatprep.subr.bf16.mxu0 %v1687_v43 }
 0x17a   :  { %1398 = vmatpush3.bf16.msra.mxu0 %v1609_v49 }
 0x17b   :  { %1399 = vmatprep.subr.bf16.mxu0 %v1687_v43 }
 0x17e   :  { %1400 = vmatpush3.bf16.msra.mxu0 %v1610_v50 }
 0x234   :  { %v1019_v53 = vpop.f32.mrb[4].mxu0  ;;  %v1060_v54 = vpop.f32.mrb[4].mxu1 }
 0x235   :  { %v1020_v55 = vadd.f32 %v1019_v53, %v654_v51  ;;  %v1021_v56 = vpop.f32.mrb[5].mxu0  ;;  %v1062_v57 = vpop.f32.mrb[5].mxu1  ;;  %v1061_v2 = vadd.f32 %v1060_v54, %v656_v58 }
 0x236   :  { %v1022_v59 = vadd.f32 %v1021_v56, %v655_v52  ;;  %v1023_v60 = vpop.f32.mrb[6].mxu0  ;;  %v1064_v61 = vpop.f32.mrb[6].mxu1  ;;  %v1063_v4 = vadd.f32 %v1062_v57, %v657_v3 }
 0x237   :  { %v1067_v62 = vmul.f32 0.5, %v1020_v55  ;;  %v1024_v63 = vpop.f32.mrb[7].mxu0  ;;  %v1065_v0 = vpop.f32.mrb[7].mxu1 }
 0x238   :  { %v1071_v1 = vmul.f32 0.5, %v1022_v59  ;;  %v1076_v5 = vmul.f32 0.5, %v1063_v4 }
 0x239   :  { %1621 = vtanh.f32 %v1067_v62 }
 0x23a   :  { %1623 = vtanh.f32 %v1071_v1 }
 0x23b   :  { %1625 = vtanh.f32 %v1061_v2 }
 0x23c   :  { %1627 = vtanh.f32 %v1076_v5 }
 0x243   :  { %v1622_v6 = vpop.eup %1621 }
 0x244   :  { %v1624_v7 = vpop.eup %1623  ;;  %v1069_v8 = vmul.f32 0.5, %v1622_v6 }
 0x245   :  { %v1073_v9 = vmul.f32 0.5, %v1624_v7  ;;  %v1626_v12 = vpop.eup %1625 }
 0x246   :  { %v1070_v10 = vadd.f32 0.5, %v1069_v8  ;;  %v1628_v17 = vpop.eup %1627 }
 0x247   :  { %v1074_v13 = vadd.f32 0.5, %v1073_v9  ;;  %v1078_v18 = vmul.f32 0.5, %v1628_v17 }
 0x248   :  { %v1081_v14 = vmul.f32 %v1626_v12, %v1070_v10 }
 0x249   :  { %v1080_v15 = vmul.f32 %v1074_v13, %v73_v11  ;;  %v1079_v19 = vadd.f32 0.5, %v1078_v18 }
 0x24b   :  { %v1082_v16 = vadd.f32 %v1081_v14, %v1080_v15 }
 0x24d   :  { %1629 = vtanh.f32 %v1082_v16  ;;  %1353 = vst [vmem:[%s1865_s11 + $0x8] sm:$0xff] %v1082_v16 }
 0x257   :  { %v1630_v20 = vpop.eup %1629 }
 0x258   :  { %v1084_v21 = vmul.f32 %v1630_v20, %v1079_v19 }
 0x25a   :  { %1352 = vst [vmem:[%s1864_s10 + $0x8] sm:$0xff] %v1084_v21  ;;  %v1087_v22 = vpack.c.bf16 %v1084_v21, %v1084_v21 }
 0x25c   :  { %1402 = vmatmul.mubr.bf16.vlgmr.msra.gmra.mrb[8].mxu0 %v1087_v22 }
 0x32f   :  { %v1187_v24 = vpop.f32.mrb[8].mxu0 }
 0x330   :  { %v1188_v25 = vadd.f32 %v1187_v24, %v1104_v23  ;;  %v1403_v26 = vpop.f32.mrb[9].mxu0 }
 0x331   :  { %v1190_v27 = vpop.f32.mrb[10].mxu0 }
 0x332   :  { %1193 = vmax.xlane.f32.xlu0 %v1188_v25  ;;  %v1404_v28 = vpop.f32.mrb[11].mxu0 }
 0x3bf   :  { %v1194_v29 = vpop.xlane.xlu0 %1193 }
 0x3c0   :  { %v1195_v30 = vsub.f32 %v1188_v25, %v1194_v29 }
 0x3c2   :  { %v1196_v31 = vmul.f32 1.442695, %v1195_v30 }
 0x3c4   :  { %1631 = vpow2.f32 %v1196_v31 }
 0x3ce   :  { %v1632_v32 = vpop.eup %1631 }
 0x3cf   :  { %1198 = vadd.xlane.f32.xlu0 %v1632_v32 }
 0x45c   :  { %v1199_v33 = vpop.xlane.xlu0 %1198 }
 0x45d   :  { %1633 = vlog2.f32 %v1199_v33 }
 0x467   :  { %v1634_v34 = vpop.eup %1633 }
 0x468   :  { %v1201_v35 = vmul.f32 0.6931472, %v1634_v34 }
 0x46a   :  { %v1202_v36 = vsub.f32 %v1195_v30, %v1201_v35 }
 0x46c   :  { %1203 = vst [vmem:[%s1863_s9] sm:$0xff] %v1202_v36 }
 0x46d   :  { %1216 = vsyncpa [#allocation5], 1 }
 0x46e   :  { %1217 = vsyncpa [#allocation7], 1 }

</bundles_post_ra>
